<compile_context>
chip_gen: v6e
topology: v6e:2x2x1
jax: 0.10.0
libtpu: 0.0.40
codegen_flags: <defaults>
</compile_context>

<pallas_src>
import functools

import jax
import jax.numpy as jnp
import numpy as np
from jax.experimental import pallas as pl
from jax.experimental.pallas import tpu as pltpu


def _round_up(a, b):
    return ((a + b - 1) // b) * b


def rln_kernel(x_ref, wb_ref, out_ref, stats_ref, *, eps, n_valid):
    # x_ref block: (nb, Lp) — nb whole samples, lane-dense flattened C*H*W.
    # Invariant (wrapper): lanes >= n_valid and padded rows are zero-filled, so
    # the reductions need no mask; padded outputs are sliced off afterwards.
    x = x_ref[...].astype(jnp.float32)                     # (nb, Lp)
    # TODO(synk): for bf16/fp8 inputs keep the elementwise pass in the native
    # dtype and only accumulate s/sq in f32 (halves VMEM traffic on v6e/v7x).

    # Fused single-pass statistics (f32 accumulation).
    s = jnp.sum(x, axis=1, keepdims=True)                  # (nb, 1)
    sq = jnp.sum(x * x, axis=1, keepdims=True)             # (nb, 1)

    inv_n = 1.0 / n_valid
    mean = s * inv_n                                       # (nb, 1)
    var = jnp.maximum(sq * inv_n - mean * mean, 0.0)       # clamp cancellation
    inv_std = jax.lax.rsqrt(var + eps)                     # EUP, no per-elem div
    std = (var + eps) * inv_std                            # == sqrt(var + eps)

    w = wb_ref[0:1, :]                                     # (1, Lp), f32
    b = wb_ref[1:2, :]                                     # (1, Lp), f32
    out_ref[...] = (((x - mean) * inv_std) * w + b).astype(out_ref.dtype)

    # Tiny per-sample stats output: lane 0 = mean, lane 1 = std (single store).
    stats_ref[...] = jnp.concatenate([mean, std], axis=-1)


def _tpu_vmem_capacity_bytes():
    try:
        return int(pltpu.get_tpu_info().vmem_capacity_bytes)
    except Exception:
        return 64 << 20        # conservative fallback (v7x per-TC VMEM)


def _choose_batch_tiling(n_rows, nb_cap, num_cores):
    """Pick (rows per block, grid steps). nb is a multiple of 8, or == N if N < 8."""
    if n_rows < 8:
        # A block dim equal to the full array dim bypasses the /8 sublane rule:
        # zero row-padding waste, single grid step.
        return n_rows, 1
    nb_cap = max(8, min(nb_cap, _round_up(n_rows, 8)))
    g0 = -(-n_rows // nb_cap)
    candidates = {g0}
    if num_cores > 1:
        if g0 == 1 and n_rows >= 16:
            candidates.add(2)               # split one block across both TCs
        if g0 > 1 and g0 % 2 == 1:
            candidates.add(g0 + 1)          # even grid -> balanced megacore work
    best = None
    for g in sorted(candidates):
        nb = _round_up(-(-n_rows // g), 8)
        per_core = -(-g // num_cores) * nb  # HBM rows moved by the busiest core
        total = g * nb                      # total rows incl. padding
        key = (per_core, total)
        if best is None or key < best[0]:
            best = (key, nb, g)
    return best[1], best[2]


def rln_forward(x, weight, bias, meta1_w, meta1_b, meta2_w, meta2_b, eps=1e-5):
    """x: (N, C, H, W) NCHW. Params are (1, C). Returns (out, rescale, rebias)."""
    N, C, H, W = x.shape
    HW = H * W
    L = C * HW
    Lp = _round_up(L, 128)                       # lane-dense, unmasked stores

    itemsize = jnp.dtype(x.dtype).itemsize

    # Per-generation budgets: v7x has 64 MiB VMEM/TC and 2 TCs; v5e/v6e have
    # 128 MiB and a single TC (2-TC detection via VMEM-capacity heuristic).
    vmem_cap = _tpu_vmem_capacity_bytes()
    num_cores = 2 if vmem_cap <= (64 << 20) else 1
    vmem_budget = min((vmem_cap * 3) // 4, 96 << 20)

    # Rows per block: ~4 MiB of input per grid step (HBM-roofline plateau),
    # capped so double-buffered in/out blocks + f32 temporaries fit the budget.
    row_in_bytes = Lp * itemsize
    row_vmem_bytes = Lp * (4 * itemsize + 8)     # 2x in + 2x out + f32 temps
    nb_vmem = max(8, ((vmem_budget // row_vmem_bytes) // 8) * 8)
    nb_4mib = max(8, (((4 << 20) // row_in_bytes) // 8) * 8)
    nb_cap = min(nb_vmem, nb_4mib)
    # TODO(synk): when even 8 rows exceed the VMEM budget (huge C*H*W, esp. on
    # v7x's 64 MiB), switch to a lane-tiled two-pass scheme (stats pass +
    # normalize pass over Lt-lane chunks) instead of whole samples per block.

    nb, grid = _choose_batch_tiling(N, nb_cap, num_cores)
    Np = nb * grid

    # Flatten + zero-pad input (padded lanes/rows are zero -> no in-kernel mask).
    xf = x.reshape(N, L)
    if Lp != L:
        xf = jnp.pad(xf, ((0, 0), (0, Lp - L)))
    if Np != N:
        xf = jnp.pad(xf, ((0, Np - N), (0, 0)))

    # Stack weight/bias, pre-expanded over spatial, into one resident (2, Lp) tile.
    w_e = jnp.broadcast_to(weight.reshape(C, 1), (C, HW)).reshape(1, L)
    b_e = jnp.broadcast_to(bias.reshape(C, 1), (C, HW)).reshape(1, L)
    wb = jnp.concatenate([w_e, b_e], axis=0).astype(jnp.float32)   # (2, L)
    if Lp != L:
        wb = jnp.pad(wb, ((0, 0), (0, Lp - L)))

    # Explicit VMEM limit: double-buffered in/out blocks + wb + temps + headroom.
    block_vmem = (2 * nb * Lp * itemsize        # x blocks (double-buffered)
                  + 2 * nb * Lp * itemsize      # out blocks (double-buffered)
                  + 2 * 2 * Lp * 4              # wb tile (double-buffered)
                  + 2 * nb * 2 * 4              # stats blocks
                  + 2 * nb * Lp * 4             # in-kernel f32 temporaries
                  + (2 << 20))                  # headroom
    vmem_limit = int(min(vmem_cap, max(block_vmem, 32 << 20)))

    kernel = functools.partial(rln_kernel, eps=eps, n_valid=L)

    out_p, stats = pl.pallas_call(
        kernel,
        out_shape=(
            jax.ShapeDtypeStruct((Np, Lp), x.dtype),
            jax.ShapeDtypeStruct((Np, 2), jnp.float32),
        ),
        grid_spec=pltpu.PrefetchScalarGridSpec(
            num_scalar_prefetch=0,
            grid=(grid,),
            in_specs=[
                pl.BlockSpec((nb, Lp), lambda i: (i, 0)),   # x block
                pl.BlockSpec((2, Lp), lambda i: (0, 0)),    # stacked weight/bias
            ],
            out_specs=[
                pl.BlockSpec((nb, Lp), lambda i: (i, 0)),   # normalized out
                pl.BlockSpec((nb, 2), lambda i: (i, 0)),    # per-sample mean/std
            ],
        ),
        compiler_params=pltpu.CompilerParams(
            dimension_semantics=("parallel",),
            vmem_limit_bytes=vmem_limit),
    )(xf, wb)

    out = out_p[:N, :L].reshape(N, C, H, W)
    mean = stats[:N, 0].reshape(N, 1, 1, 1)
    std = stats[:N, 1].reshape(N, 1, 1, 1)

    # meta1/meta2 are Conv2d(1, dim, 1) applied to a (N,1,1,1) image -> a
    # per-output-channel affine of the scalar std / mean (done in the wrapper
    # to keep kernel outputs lane-dense).
    rescale = std * meta1_w.reshape(1, C, 1, 1) + meta1_b.reshape(1, C, 1, 1)
    rebias = mean * meta2_w.reshape(1, C, 1, 1) + meta2_b.reshape(1, C, 1, 1)
    return out, rescale.astype(x.dtype), rebias.astype(x.dtype)


def rln_reference(x, weight, bias, meta1_w, meta1_b, meta2_w, meta2_b, eps=1e-5):
    """Pure-JAX reference mirroring the PyTorch forward."""
    mean = jnp.mean(x, axis=(1, 2, 3), keepdims=True)
    std = jnp.sqrt(jnp.mean((x - mean) ** 2, axis=(1, 2, 3), keepdims=True) + eps)
    normalized = (x - mean) / std
    C = x.shape[1]
    out = normalized * weight.reshape(1, C, 1, 1) + bias.reshape(1, C, 1, 1)
    rescale = std * meta1_w.reshape(1, C, 1, 1) + meta1_b.reshape(1, C, 1, 1)
    rebias = mean * meta2_w.reshape(1, C, 1, 1) + meta2_b.reshape(1, C, 1, 1)
    return out, rescale, rebias


def _run_case(key, N, C, H, W, eps=1e-5):
    kx, k1, k2 = jax.random.split(key, 3)
    x = jax.random.normal(kx, (N, C, H, W), dtype=jnp.float32)

    # Parameter init matching the module's __init__:
    #   weight = ones, bias = zeros
    #   meta1: weight ~ trunc_normal(std=0.02), bias = 1
    #   meta2: weight ~ trunc_normal(std=0.02), bias = 0
    weight = jnp.ones((1, C), dtype=jnp.float32)
    bias = jnp.zeros((1, C), dtype=jnp.float32)
    meta1_w = jax.random.truncated_normal(k1, -2.0, 2.0, (1, C), jnp.float32) * 0.02
    meta1_b = jnp.ones((1, C), dtype=jnp.float32)
    meta2_w = jax.random.truncated_normal(k2, -2.0, 2.0, (1, C), jnp.float32) * 0.02
    meta2_b = jnp.zeros((1, C), dtype=jnp.float32)

    out, rescale, rebias = rln_forward(
        x, weight, bias, meta1_w, meta1_b, meta2_w, meta2_b, eps=eps)
    jax.block_until_ready((out, rescale, rebias))

    out_r, rescale_r, rebias_r = rln_reference(
        x, weight, bias, meta1_w, meta1_b, meta2_w, meta2_b, eps=eps)
    np.testing.assert_allclose(np.asarray(out), np.asarray(out_r),
                               rtol=1e-5, atol=1e-5)
    np.testing.assert_allclose(np.asarray(rescale), np.asarray(rescale_r),
                               rtol=1e-5, atol=1e-5)
    np.testing.assert_allclose(np.asarray(rebias), np.asarray(rebias_r),
                               rtol=1e-5, atol=1e-5)


if __name__ == "__main__":
    key = jax.random.PRNGKey(0)
    k_a, k_b, k_c = jax.random.split(key, 3)

    # Small shapes consistent with the module: N=2, dim(C)=4, H=W=16.
    _run_case(k_a, N=2, C=4, H=16, W=16)
    # Non-128-multiple spatial + odd batch (exercises lane padding / full-dim row block).
    _run_case(k_b, N=3, C=4, H=15, W=15)
    # Batch >= 8 (exercises the /8 row-rounding + grid-shaping path).
    _run_case(k_c, N=9, C=4, H=8, W=8)

    print("KERNEL_OK")
</pallas_src>

<mosaic_0001>
module attributes {stable_mosaic.version = 11 : i64} {
  func.func @rln_kernel(%arg0: i32, %arg1: memref<2x1024xf32, #tpu.memory_space<vmem>>, %arg2: memref<2x1024xf32, #tpu.memory_space<vmem>>, %arg3: memref<2x1024xf32, #tpu.memory_space<vmem>>, %arg4: memref<2x2xf32, #tpu.memory_space<vmem>>) attributes {dimension_semantics = [#tpu.dimension_semantics<parallel>], iteration_bounds = array<i64: 1>, scalar_prefetch = 0 : i64, scratch_operands = 0 : i64, tpu.core_type = #tpu.core_type<tc>, window_params = [{transform_indices = @transform_0, window_bounds = array<i64: 2, 1024>}, {pipeline_mode = #tpu.pipeline_mode<synchronous>, transform_indices = @transform_1, window_bounds = array<i64: 2, 1024>}, {transform_indices = @transform_2, window_bounds = array<i64: 2, 1024>}, {transform_indices = @transform_3, window_bounds = array<i64: 2, 2>}]} {
    %c0 = arith.constant 0 : index
    %c0_0 = arith.constant 0 : index
    %0 = vector.load %arg1[%c0, %c0_0] : memref<2x1024xf32, #tpu.memory_space<vmem>>, vector<2x1024xf32>
    %cst = arith.constant dense<0.000000e+00> : vector<2xf32>
    %1 = vector.multi_reduction <add>, %0, %cst [1] : vector<2x1024xf32> to vector<2xf32>
    %2 = vector.shape_cast %1 : vector<2xf32> to vector<2x1xf32>
    %3 = arith.mulf %0, %0 : vector<2x1024xf32>
    %cst_1 = arith.constant dense<0.000000e+00> : vector<2xf32>
    %4 = vector.multi_reduction <add>, %3, %cst_1 [1] : vector<2x1024xf32> to vector<2xf32>
    %5 = vector.shape_cast %4 : vector<2xf32> to vector<2x1xf32>
    %cst_2 = arith.constant 9.765625E-4 : f32
    %6 = vector.broadcast %cst_2 : f32 to vector<2x1xf32>
    %7 = arith.mulf %2, %6 : vector<2x1xf32>
    %cst_3 = arith.constant 9.765625E-4 : f32
    %8 = vector.broadcast %cst_3 : f32 to vector<2x1xf32>
    %9 = arith.mulf %5, %8 : vector<2x1xf32>
    %10 = arith.mulf %7, %7 : vector<2x1xf32>
    %11 = arith.subf %9, %10 : vector<2x1xf32>
    %cst_4 = arith.constant 0.000000e+00 : f32
    %12 = vector.broadcast %cst_4 : f32 to vector<2x1xf32>
    %13 = arith.maximumf %11, %12 : vector<2x1xf32>
    %cst_5 = arith.constant 9.99999974E-6 : f32
    %14 = vector.broadcast %cst_5 : f32 to vector<2x1xf32>
    %15 = arith.addf %13, %14 : vector<2x1xf32>
    %16 = math.rsqrt %15 : vector<2x1xf32>
    %cst_6 = arith.constant 9.99999974E-6 : f32
    %17 = vector.broadcast %cst_6 : f32 to vector<2x1xf32>
    %18 = arith.addf %13, %17 : vector<2x1xf32>
    %19 = arith.mulf %18, %16 : vector<2x1xf32>
    %c0_7 = arith.constant 0 : index
    %c0_8 = arith.constant 0 : index
    %20 = vector.load %arg2[%c0_7, %c0_8] : memref<2x1024xf32, #tpu.memory_space<vmem>>, vector<1x1024xf32>
    %c1 = arith.constant 1 : index
    %c0_9 = arith.constant 0 : index
    %21 = vector.load %arg2[%c1, %c0_9] : memref<2x1024xf32, #tpu.memory_space<vmem>>, vector<1x1024xf32>
    %22 = vector.broadcast %7 : vector<2x1xf32> to vector<2x1024xf32>
    %23 = arith.subf %0, %22 : vector<2x1024xf32>
    %24 = vector.broadcast %16 : vector<2x1xf32> to vector<2x1024xf32>
    %25 = arith.mulf %23, %24 : vector<2x1024xf32>
    %26 = vector.broadcast %20 : vector<1x1024xf32> to vector<2x1024xf32>
    %27 = arith.mulf %25, %26 : vector<2x1024xf32>
    %28 = vector.broadcast %21 : vector<1x1024xf32> to vector<2x1024xf32>
    %29 = arith.addf %27, %28 : vector<2x1024xf32>
    %c0_10 = arith.constant 0 : index
    %c0_11 = arith.constant 0 : index
    %30 = vector.load %arg3[%c0_10, %c0_11] : memref<2x1024xf32, #tpu.memory_space<vmem>>, vector<2x1024xf32>
    tpu.vector_store %arg3[%c0_10, %c0_11], %29 {strides = array<i32>} : memref<2x1024xf32, #tpu.memory_space<vmem>>, vector<2x1024xf32>,
    %31 = tpu.concatenate %7, %19 in 1 : vector<2x1xf32>, vector<2x1xf32> -> vector<2x2xf32>
    %c0_12 = arith.constant 0 : index
    %c0_13 = arith.constant 0 : index
    %32 = vector.load %arg4[%c0_12, %c0_13] : memref<2x2xf32, #tpu.memory_space<vmem>>, vector<2x2xf32>
    tpu.vector_store %arg4[%c0_12, %c0_13], %31 {strides = array<i32>} : memref<2x2xf32, #tpu.memory_space<vmem>>, vector<2x2xf32>,
    return
  }
  func.func @transform_0(%arg0: i32) -> (i32, i32) {
    %c0_i32 = arith.constant 0 : i32
    %c0_i32_0 = arith.constant 0 : i32
    return %arg0, %c0_i32 : i32, i32
  }
  func.func @transform_1(%arg0: i32) -> (i32, i32) {
    %c0_i32 = arith.constant 0 : i32
    %c0_i32_0 = arith.constant 0 : i32
    %c0_i32_1 = arith.constant 0 : i32
    return %c0_i32, %c0_i32_0 : i32, i32
  }
  func.func @transform_2(%arg0: i32) -> (i32, i32) {
    %c0_i32 = arith.constant 0 : i32
    %c0_i32_0 = arith.constant 0 : i32
    return %arg0, %c0_i32 : i32, i32
  }
  func.func @transform_3(%arg0: i32) -> (i32, i32) {
    %c0_i32 = arith.constant 0 : i32
    %c0_i32_0 = arith.constant 0 : i32
    return %arg0, %c0_i32 : i32, i32
  }
}

</mosaic_0001>

<bundles_post_ra>
// kernel: tpu_custom_call.1
= control target key start
LH: loop header
LB: loop body
LE: loop exit
PB: predicated region body
PF: predicated region fallthrough
CT: control target
= control target key end

     0   :  { %9 = vsyncpa [#allocation3], 0  ;;  %s575_s0 = inlined_call_operand.hbm [shape: f32[2,1024], index: 0, kind: input, shape index: {}]   ;;  %s576_s1 = inlined_call_operand.hbm [shape: f32[2,1024], index: 1, kind: input, shape index: {}]   ;;  %s577_s2 = inlined_call_operand.hbm [shape: f32[2,1024], index: 2, kind: output, shape index: {0}]   ;;  %s578_s3 = inlined_call_operand.hbm [shape: f32[2,2], index: 3, kind: output, shape index: {1}]  }
   0x1   :  { %10 = vsyncpa [#allocation6], 0 }
   0x2   :  { %11 = vsyncpa [#allocation4], 0 }
   0x3   :  { %12 = vsyncpa [#allocation9], 0  ;;  %s475_s12 = smov [#allocation2]   ;;  %s476_s14 = smov [#allocation5]  }
   0x4   :  { %s19_s13 = sshll.u32 %s475_s12, 4  ;;  %s29_s15 = sshll.u32 %s476_s14, 4  ;;  %s20_s13 = int_to_ptr.vmem [resolvable:$true] %s19_s13  ;;  %s30_s15 = int_to_ptr.vmem [resolvable:$true] %s29_s15 }
   0x5   :  { %s395_s16 = scalar_lea.vmem %s20_s13, 256  ;;  %p400_p1 = scmp.lt.s32.totalorder %s20_s13, %s20_s13 }
   0x6   :  { %p396_p0 = scmp.ne.s32.totalorder %s20_s13, %s395_s16  ;;  %p401_p2 = scmp.lt.s32.totalorder %s395_s16, %s395_s16 }
   0x8   :  { %p402_p3 = por %p401_p2, %p400_p1 }
   0xa   :  { %p403_p4 = pnand %p402_p3, %p396_p0 }
   0xc   :  { %406 = shalt.err (!%p403_p4)
}
   0xd   :  { %22 = dma.hbm_to_vmem [thread:$0]  %s575_s0, 256, %s20_s13, [#allocation3]  }
   0xe   :  { %s415_s19 = scalar_lea.vmem %s30_s15, 256  ;;  %p420_p6 = scmp.lt.s32.totalorder %s30_s15, %s30_s15 }
   0xf   :  { %p416_p5 = scmp.ne.s32.totalorder %s30_s15, %s415_s19  ;;  %p421_p7 = scmp.lt.s32.totalorder %s415_s19, %s415_s19 }
  0x11   :  { %p422_p8 = por %p421_p7, %p420_p6 }
  0x13   :  { %p423_p9 = pnand %p422_p8, %p416_p5 }
  0x15   :  { %426 = shalt.err (!%p423_p9)
}
  0x16   :  { %32 = dma.hbm_to_vmem [thread:$0]  %s576_s1, 256, %s30_s15, [#allocation6]  }
  0x17   :  { %467 = dma.done.wait [#allocation3], 256  }
  0x18   :  { %468 = vsyncadd [#allocation3], 4294967040 }
  0x19   :  { %469 = dma.done.wait [#allocation6], 256  }
  0x1a   :  { %470 = vsyncadd [#allocation6], 4294967040  ;;  %v47_v0 = vlaneseq  ;;  %v477_v1 = vmov 1983009808   ;;  %v512_v6 = vld [vmem:[#allocation2] sm:$0xff]  ;;  %v514_v7 = vld [vmem:[#allocation2 + $0x8] sm:$0xff] }
  0x1b   :  { %v45_v2 = vunpack.c.l.s4 %v477_v1  ;;  %v43_v8 = vcombine.high %v512_v6, %v512_v6  ;;  %vm85_vm0 = vcmask 1041408   ;;  %v60_v10 = vcombine.high %v514_v7, %v514_v7  ;;  %s479_s0 = smov [#allocation8]   ;;  %s480_s22 = smov [#allocation7]  }
  0x1c   :  { %v507_v3 = vshrl.u32 %v47_v0, 7  ;;  %v103_v11 = vmul.f32 %v512_v6, %v512_v6  ;;  %v104_v16 = vmul.f32 %v514_v7, %v514_v7  ;;  %v174_v0 = vld [vmem:[#allocation5] ss:$2 sm:$0xff]  ;;  %s363_s1 = sshll.u32 %s479_s0, 4  ;;  %vm343_vm1 = vcmask 7168   ;;  %s353_s23 = sshll.u32 %s480_s22, 4  ;;  %s364_s1 = int_to_ptr.vmem [resolvable:$true] %s363_s1  ;;  %s354_s23 = int_to_ptr.vmem [resolvable:$true] %s353_s23 }
  0x1d   :  { %v46_v4 = vunpack.c.0.s8 %v45_v2  ;;  %vm345_vm2 = vcmask 9216   ;;  %s427_s24 = scalar_lea.vmem %s364_s1, 32  ;;  %p432_p11 = scmp.lt.s32.totalorder %s364_s1, %s364_s1 }
  0x1e   :  { %v107_v17 = vcombine.high %v103_v11, %v103_v11  ;;  %v124_v28 = vcombine.high %v104_v16, %v104_v16  ;;  %v202_v60 = vsub.s32 0, %v507_v3  ;;  %v206_v61 = vsub.s32 1, %v507_v3  ;;  %p428_p10 = scmp.ne.s32.totalorder %s364_s1, %s427_s24  ;;  %p433_p12 = scmp.lt.s32.totalorder %s427_s24, %s427_s24 }
  0x1f   :  { %v510_v5 = vsub.s32 %v46_v4, %v507_v3  ;;  %v210_v62 = vsub.s32 2, %v507_v3  ;;  %v214_v63 = vsub.s32 3, %v507_v3  ;;  %v218_v1 = vsub.s32 4, %v507_v3 }
  0x20   :  { %v222_v2 = vsub.s32 5, %v507_v3  ;;  %v226_v4 = vsub.s32 6, %v507_v3  ;;  %p434_p13 = por %p433_p12, %p432_p11 }
  0x21   :  { %v50_v9 = vrot.slane %v512_v6, %v510_v5  ;;  %v57_v12 = vrot.slane %v43_v8, %v510_v5  ;;  %v67_v14 = vrot.slane %v514_v7, %v510_v5  ;;  %v114_v18 = vrot.slane %v103_v11, %v510_v5 }
  0x22   :  { %v74_v22 = vrot.slane %v60_v10, %v510_v5  ;;  %v121_v24 = vrot.slane %v107_v17, %v510_v5  ;;  %v131_v31 = vrot.slane %v104_v16, %v510_v5  ;;  %v138_v40 = vrot.slane %v124_v28, %v510_v5  ;;  %p435_p0 = pnand %p434_p13, %p428_p10 }
  0x23   :  { %v58_v13 = vcombine.high %v50_v9, %v50_v9  ;;  %v86_v15 = vsel %vm85_vm0, %v50_v9, 0.0  ;;  %v59_v19 = vcombine.high %v57_v12, %v57_v12  ;;  %v89_v21 = vsel %vm85_vm0, %v57_v12, 0.0 }
  0x24   :  { %v75_v25 = vcombine.high %v67_v14, %v67_v14  ;;  %v122_v27 = vcombine.high %v114_v18, %v114_v18  ;;  %v123_v30 = vcombine.high %v121_v24, %v121_v24  ;;  %v149_v32 = vsel %vm85_vm0, %v114_v18, 0.0 }
  0x25   :  { %v87_v20 = vsel %vm85_vm0, %v58_v13, 0.0  ;;  %v91_v26 = vsel %vm85_vm0, %v59_v19, 0.0  ;;  %v93_v33 = vsel %vm85_vm0, %v67_v14, 0.0  ;;  %v152_v35 = vsel %vm85_vm0, %v121_v24, 0.0  ;;  %v176_v13 = vld [vmem:[#allocation5 + $0x1] ss:$2 sm:$0xff] }
  0x26   :  { %v88_v23 = vadd.f32 %v87_v20, %v86_v15  ;;  %v150_v34 = vsel %vm85_vm0, %v122_v27, 0.0  ;;  %v76_v36 = vcombine.high %v74_v22, %v74_v22  ;;  %v95_v39 = vsel %vm85_vm0, %v75_v25, 0.0 }
  0x27   :  { %v151_v38 = vadd.f32 %v150_v34, %v149_v32  ;;  %v139_v41 = vcombine.high %v131_v31, %v131_v31  ;;  %v154_v42 = vsel %vm85_vm0, %v123_v30, 0.0  ;;  %v97_v45 = vsel %vm85_vm0, %v74_v22, 0.0 }
  0x28   :  { %v90_v29 = vadd.f32 %v89_v21, %v88_v23  ;;  %v156_v46 = vsel %vm85_vm0, %v131_v31, 0.0  ;;  %v99_v49 = vsel %vm85_vm0, %v76_v36, 0.0  ;;  %v140_v50 = vcombine.high %v138_v40, %v138_v40 }
  0x29   :  { %v153_v44 = vadd.f32 %v152_v35, %v151_v38  ;;  %v158_v51 = vsel %vm85_vm0, %v139_v41, 0.0  ;;  %v160_v54 = vsel %vm85_vm0, %v138_v40, 0.0  ;;  %v230_v8 = vsub.s32 7, %v507_v3 }
  0x2a   :  { %v92_v37 = vadd.f32 %v91_v26, %v90_v29  ;;  %v162_v57 = vsel %vm85_vm0, %v140_v50, 0.0  ;;  %v203_v9 = vrot.slane %v174_v0, %v202_v60  ;;  %v207_v10 = vrot.slane %v174_v0, %v206_v61 }
  0x2b   :  { %v155_v48 = vadd.f32 %v154_v42, %v153_v44  ;;  %v211_v11 = vrot.slane %v174_v0, %v210_v62  ;;  %v215_v12 = vrot.slane %v174_v0, %v214_v63  ;;  %v219_v14 = vrot.slane %v174_v0, %v218_v1 }
  0x2c   :  { %v94_v43 = vadd.f32 %v93_v33, %v92_v37  ;;  %v223_v15 = vrot.slane %v174_v0, %v222_v2  ;;  %v227_v16 = vrot.slane %v174_v0, %v226_v4  ;;  %v231_v17 = vrot.slane %v174_v0, %v230_v8 }
  0x2d   :  { %v157_v53 = vadd.f32 %v156_v46, %v155_v48  ;;  %v232_v18 = vcombine.low %v203_v9, %v207_v10  ;;  %v233_v19 = vcombine.low %v211_v11, %v215_v12  ;;  %v274_v20 = vrot.slane %v176_v13, %v202_v60 }
  0x2e   :  { %v96_v47 = vadd.f32 %v95_v39, %v94_v43  ;;  %v278_v21 = vrot.slane %v176_v13, %v206_v61  ;;  %v249_v22 = vcombine.low %v219_v14, %v223_v15  ;;  %v250_v23 = vcombine.low %v227_v16, %v231_v17 }
  0x2f   :  { %v159_v56 = vadd.f32 %v158_v51, %v157_v53  ;;  %v282_v24 = vrot.slane %v176_v13, %v210_v62  ;;  %v286_v25 = vrot.slane %v176_v13, %v214_v63  ;;  %v240_v26 = vrot.slane %v232_v18, %v510_v5 }
  0x30   :  { %v98_v52 = vadd.f32 %v97_v45, %v96_v47  ;;  %v247_v27 = vrot.slane %v233_v19, %v510_v5  ;;  %v290_v28 = vrot.slane %v176_v13, %v218_v1  ;;  %v294_v29 = vrot.slane %v176_v13, %v222_v2 }
  0x31   :  { %v161_v58 = vadd.f32 %v160_v54, %v159_v56  ;;  %v257_v30 = vrot.slane %v249_v22, %v510_v5  ;;  %v264_v31 = vrot.slane %v250_v23, %v510_v5  ;;  %v298_v32 = vrot.slane %v176_v13, %v226_v4 }
  0x32   :  { %v100_v55 = vadd.f32 %v99_v49, %v98_v52  ;;  %v302_v33 = vrot.slane %v176_v13, %v230_v8  ;;  %v248_v34 = vcombine.low %v240_v26, %v247_v27  ;;  %v303_v35 = vcombine.low %v274_v20, %v278_v21 }
  0x33   :  { %v163_v59 = vadd.f32 %v162_v57, %v161_v58  ;;  %v304_v36 = vcombine.low %v282_v24, %v286_v25  ;;  %v320_v37 = vcombine.low %v290_v28, %v294_v29  ;;  %v265_v38 = vcombine.low %v257_v30, %v264_v31 }
  0x34   :  { %101 = vadd.xlane.f32.xlu0 %v100_v55  ;;  %v321_v39 = vcombine.low %v298_v32, %v302_v33  ;;  %v311_v40 = vrot.slane %v303_v35, %v510_v5  ;;  %v478_v53 = vmov 269488144  }
  0x35   :  { %v318_v41 = vrot.slane %v304_v36, %v510_v5  ;;  %v328_v42 = vrot.slane %v320_v37, %v510_v5  ;;  %v179_v54 = vunpack.c.l.s4 %v478_v53 }
  0x36   :  { %v335_v43 = vrot.slane %v321_v39, %v510_v5 }
  0x37   :  { %v319_v44 = vcombine.low %v311_v40, %v318_v41  ;;  %v180_v56 = vunpack.c.0.s8 %v179_v54 }
  0x38   :  { %164 = vadd.xlane.f32.xlu0 %v163_v59  ;;  %v336_v45 = vcombine.low %v328_v42, %v335_v43 }
  0x39   :  { %v183_v57 = vsub.s32 %v180_v56, %v507_v3 }
  0xbd   :  { %v102_v46 = vpop.xlane.xlu0 %101 }
  0xbe   :  { %v166_v47 = vmul.f32 0.0009765625, %v102_v46 }
  0xc0   :  { %v168_v49 = vmul.f32 %v166_v47, %v166_v47  ;;  %v184_v58 = vrot.slane %v166_v47, %v183_v57 }
  0xc1   :  { %v165_v48 = vpop.xlane.xlu0 %164 }
  0xc2   :  { %v167_v50 = vmul.f32 0.0009765625, %v165_v48  ;;  %v186_v59 = vsub.f32 %v512_v6, %v184_v58  ;;  %v187_v60 = vsub.f32 %v514_v7, %v184_v58 }
  0xc4   :  { %v169_v51 = vsub.f32 %v167_v50, %v168_v49 }
  0xc6   :  { %v170_v52 = vmax.f32 %v169_v51, 0.0 }
  0xc8   :  { %v171_v55 = vadd.f32 1e-05, %v170_v52 }
  0xca   :  { %385 = vrsqrt.f32 %v171_v55 }
  0xd7   :  { %v386_v5 = vpop.eup %385 }
  0xd8   :  { %v173_v61 = vmul.f32 %v386_v5, %v171_v55  ;;  %v195_v62 = vrot.slane %v386_v5, %v183_v57 }
  0xda   :  { %v197_v63 = vmul.f32 %v195_v62, %v186_v59  ;;  %v198_v0 = vmul.f32 %v195_v62, %v187_v60  ;;  %v344_v1 = vsel %vm343_vm1, %v166_v47, %v173_v61 }
  0xdb   :  { %346 = vst.msk [vmem:[#allocation8] sm:$0x3] %vm345_vm2, %v344_v1 }
  0xdc   :  { %v268_v3 = vmul.f32 %v248_v34, %v197_v63  ;;  %v269_v2 = vmul.f32 %v265_v38, %v198_v0 }
  0xdd   :  { %438 = shalt.err (!%p435_p0)
}
  0xde   :  { %366 = dma.vmem_to_hbm [thread:$0]  %s364_s1, 32, %s578_s3, [#allocation9]   ;;  %v339_v6 = vadd.f32 %v319_v44, %v268_v3  ;;  %v340_v7 = vadd.f32 %v336_v45, %v269_v2 }
  0xdf   :  { %s447_s27 = scalar_lea.vmem %s354_s23, 256  ;;  %p452_p2 = scmp.lt.s32.totalorder %s354_s23, %s354_s23 }
  0xe0   :  { %341 = vst [vmem:[#allocation7] sm:$0xff] %v339_v6  ;;  %342 = vst [vmem:[#allocation7 + $0x8] sm:$0xff] %v340_v7  ;;  %p448_p1 = scmp.ne.s32.totalorder %s354_s23, %s447_s27  ;;  %p453_p3 = scmp.lt.s32.totalorder %s447_s27, %s447_s27 }
  0xe2   :  { %p454_p4 = por %p453_p3, %p452_p2 }
  0xe4   :  { %p455_p5 = pnand %p454_p4, %p448_p1 }
  0xe6   :  { %458 = shalt.err (!%p455_p5)
}
  0xe7   :  { %356 = dma.vmem_to_hbm [thread:$0]  %s354_s23, 256, %s577_s2, [#allocation4]  }
  0xe8   :  { %471 = dma.done.wait [#allocation4], 256  }
  0xe9   :  { %472 = vsyncadd [#allocation4], 4294967040 }
  0xea   :  { %473 = dma.done.wait [#allocation9], 32  }
  0xeb   :  { %474 = vsyncadd [#allocation9], 4294967264 }
  0xec   :  { %373 = vsyncpa [#allocation3], 1 }
  0xed   :  { %374 = vsyncpa [#allocation6], 1 }
  0xee   :  { %375 = vsyncpa [#allocation4], 1 }
  0xef   :  { %376 = vsyncpa [#allocation9], 1 }

</bundles_post_ra>
